<compile_context>
chip_gen: v7x
topology: tpu7x:2x2x1
jax: 0.10.0
libtpu: 0.0.40
codegen_flags: <defaults>
</compile_context>

<pallas_src>
import functools

import jax
import jax.numpy as jnp
from jax.experimental import pallas as pl
from jax.experimental.pallas import tpu as pltpu

_LANE = 128


def _round_up(v, m):
    return (v + m - 1) // m * m


# ----------------------------------------------------------------------------
# Kernel: grid = (K-1 recursion passes, row tiles i, contraction tiles j).
# In resident mode the j axis collapses to 1 and the contraction is a static
# in-kernel loop over column tiles of the VMEM-resident adjacency.
# ----------------------------------------------------------------------------
def _cheb_kernel(K, tm, num_t, resident,
                 adj_ref, x_hbm_ref, w_ref, b_ref, out_ref,
                 acc_ref, t_ref, dma_sem):
    kk = pl.program_id(0)          # recursion pass: builds T_{kk+1}
    i = pl.program_id(1)           # output / row tile
    j = pl.program_id(2)           # contraction tile (size-1 axis if resident)
    nj = pl.num_programs(2)

    # One-time: DMA T_0 = x (padded f32) from HBM into level 0 of the resident
    # Chebyshev state, so every later read comes from t_ref (no per-step
    # dual-source select, no uninitialized-scratch reads).
    @pl.when((kk == 0) & (i == 0) & (j == 0))
    def _load_t0():
        cp_ = pltpu.make_async_copy(x_hbm_ref, t_ref.at[pl.ds(0, num_t)],
                                    dma_sem)
        cp_.start()
        cp_.wait()

    @pl.when(j == 0)
    def _init_acc():
        acc_ref[...] = jnp.zeros_like(acc_ref)

    # Accumulate rows i of L_hat @ T_kk.  D^{-1/2} scaling and the minus sign
    # are already folded into the bf16 adjacency.
    if resident:
        ri = pl.multiple_of(i * tm, tm)
        for jj in range(num_t):                       # static unroll, no DMA
            a_tile = adj_ref[pl.ds(ri, tm), pl.ds(jj * tm, tm)]
            rhs = t_ref[kk * num_t + jj].astype(jnp.bfloat16)
            acc_ref[...] += jnp.dot(a_tile, rhs,
                                    preferred_element_type=jnp.float32)
    else:
        rhs = t_ref[kk * num_t + j].astype(jnp.bfloat16)
        acc_ref[...] += jnp.dot(adj_ref[...], rhs,
                                preferred_element_type=jnp.float32)

    # Finalize this row tile of T_{kk+1} at the last contraction step.
    @pl.when(j == nj - 1)
    def _finalize():
        l_res = acc_ref[...]                              # rows i of L_hat T_kk
        prev2 = t_ref[jnp.maximum(kk - 1, 0) * num_t + i]  # T_{kk-1}, rows i
        # T_1 = L_hat T_0 ; T_{k+1} = 2 L_hat T_k - T_{k-1}
        t_new = jnp.where(kk == 0, l_res, 2.0 * l_res - prev2)
        t_ref[(kk + 1) * num_t + i] = t_new

        # Last pass: fused projection over all K orders + bias + ReLU
        # (single MXU pass over the K*cp contraction, lane-dense output).
        @pl.when(kk == K - 2)
        def _project():
            parts = [t_ref[lvl * num_t + i] for lvl in range(K - 1)]
            parts.append(t_new)
            t_cat = jnp.concatenate(parts, axis=-1).astype(jnp.bfloat16)
            proj = jnp.dot(t_cat, w_ref[...],
                           preferred_element_type=jnp.float32)
            out_ref[...] = jnp.maximum(proj + b_ref[...], 0.0)


# ----------------------------------------------------------------------------
# Tiling / residency selection against a per-generation VMEM budget.
# ----------------------------------------------------------------------------
def _choose_tiling(N, K, cp, cop, budget):
    """Return (tm, n_pad, num_t, resident)."""
    n0 = _round_up(max(N, 1), _LANE)

    def fixed_bytes(n_pad, tm):
        return (K * n_pad * cp * 4           # resident Chebyshev state T_0..T_{K-1}
                + K * cp * cop * 2 + cop * 4  # fused weights + bias
                + tm * cp * 4                 # contraction accumulator
                + 2 * tm * cop * 4            # double-buffered output tile
                + (1 << 20))                  # misc headroom (sems, spills)

    # Resident adjacency: DMA'd once, sliced in-kernel -> minimal padding.
    tm = min(1024, n0)
    while n0 % tm:
        tm //= 2
    if 2 * n0 * n0 + fixed_bytes(n0, tm) <= budget:
        return tm, n0, n0 // tm, True

    # Streamed adjacency: biggest tile whose double-buffered footprint fits
    # and whose padding waste stays modest (small tiles make the kernel
    # per-grid-step-overhead bound).
    for tm in (2048, 1024, 512, 256, 128):
        if tm > n0:
            continue
        n_pad = _round_up(N, tm)
        if tm > 128 and n_pad * n_pad > (n0 * n0) * 121 // 100:
            continue                          # >~20% extra padded work
        if 4 * tm * tm + fixed_bytes(n_pad, tm) <= budget:
            return tm, n_pad, n_pad // tm, False

    # TODO(synk): graphs whose O(K*N*C) Chebyshev state exceeds VMEM need a
    # different design (spill T_k to HBM between passes).
    tm = 128
    n_pad = _round_up(N, tm)
    return tm, n_pad, n_pad // tm, False


# ----------------------------------------------------------------------------
# Wrapper: Laplacian glue + lane-dense padding + pallas_call.
# ----------------------------------------------------------------------------
def cheb_net_forward(x, edge_index, edge_weight, weights, bias, *, num_nodes):
    N = num_nodes
    K, c_in, c_out = weights.shape
    if K < 2:
        raise ValueError("kernel assumes ChebConv K >= 2 (module default K=3)")

    # --- graph glue: degrees (O(E)) and per-node D^{-1/2} -------------------
    # NOTE: lambda_max is assumed to be exactly 2.0 (ChebConv 'sym' default),
    # which makes the scaled Laplacian -D^{-1/2} A D^{-1/2} with zero diag.
    row, col = edge_index[0], edge_index[1]
    if edge_weight is None:
        edge_weight = jnp.ones(row.shape, dtype=jnp.float32)
    ew = jnp.where(row != col, edge_weight.astype(jnp.float32), 0.0)  # no self loops
    deg = jnp.zeros((N,), jnp.float32).at[row].add(ew)
    dis = jnp.where(deg > 0.0, jax.lax.rsqrt(deg), 0.0)

    # --- per-generation VMEM budget -----------------------------------------
    try:
        vmem_cap = int(pltpu.get_tpu_info().vmem_capacity_bytes)
    except Exception:
        vmem_cap = 64 * 1024 * 1024               # conservative (v7x physical)
    vmem_limit = int(vmem_cap * 0.80)             # ~51 MiB v7x / ~102 MiB v5e,v6e
    data_budget = int(vmem_limit * 0.85)

    cp = _round_up(c_in, _LANE)                   # padded input channels
    cop = _round_up(c_out, _LANE)                 # padded output channels
    tm, n_pad, num_t, resident = _choose_tiling(N, K, cp, cop, data_budget)

    # --- single fused scatter: padded, scaled, negated, bf16 L_hat ----------
    # (duplicate edges accumulate in bf16; one O(N^2) array total)
    # TODO(synk): cache this across layers / steps when the graph is static.
    val = (-(dis[row] * ew * dis[col])).astype(jnp.bfloat16)
    lhat_p = jnp.zeros((n_pad, n_pad), jnp.bfloat16).at[row, col].add(val)

    x_p = (jnp.zeros((n_pad, cp), jnp.float32)
           .at[:N, :c_in].set(x.astype(jnp.float32))
           .reshape(num_t, tm, cp))
    w_p = (jnp.zeros((K, cp, cop), jnp.bfloat16)
           .at[:, :c_in, :c_out].set(weights.astype(jnp.bfloat16))
           .reshape(K * cp, cop))                 # fused [W_0 | W_1 | ...] rows
    b_p = jnp.zeros((1, cop), jnp.float32).at[0, :c_out].set(
        bias.astype(jnp.float32))

    grid = (K - 1, num_t, 1 if resident else num_t)

    if resident:
        adj_spec = pl.BlockSpec((n_pad, n_pad), lambda k, i, j: (0, 0),
                                pipeline_mode=pl.Buffered(1))
        adj_bytes = n_pad * n_pad * 2                      # DMA'd once
    else:
        adj_spec = pl.BlockSpec((tm, tm), lambda k, i, j: (i, j))
        adj_bytes = (K - 1) * n_pad * n_pad * 2            # re-streamed per pass

    flops = 2 * (K - 1) * n_pad * n_pad * cp + 2 * n_pad * (K * cp) * cop
    bytes_accessed = (adj_bytes + n_pad * cp * 4 + K * cp * cop * 2 + cop * 4
                      + n_pad * cop * 4)

    out = pl.pallas_call(
        functools.partial(_cheb_kernel, K, tm, num_t, resident),
        out_shape=jax.ShapeDtypeStruct((n_pad, cop), jnp.float32),
        grid_spec=pltpu.PrefetchScalarGridSpec(
            num_scalar_prefetch=0,
            grid=grid,
            in_specs=[
                adj_spec,
                # x stays in HBM; one manual DMA fills T_0 in scratch.
                pl.BlockSpec(memory_space=pl.ANY),
                # grid-invariant operands: single-buffered, DMA'd once.
                pl.BlockSpec((K * cp, cop), lambda k, i, j: (0, 0),
                             pipeline_mode=pl.Buffered(1)),
                pl.BlockSpec((1, cop), lambda k, i, j: (0, 0),
                             pipeline_mode=pl.Buffered(1)),
            ],
            # NOTE: this block is flushed whenever i changes on every pass even
            # though the kernel only writes it on the last pass; the early
            # flushes are wasted (small O(K*N*cop)) writes of stale VMEM that
            # are always overwritten -- never input_output_alias this output.
            out_specs=pl.BlockSpec((tm, cop), lambda k, i, j: (i, 0)),
            scratch_shapes=[
                pltpu.VMEM((tm, cp), jnp.float32),              # j accumulator
                pltpu.VMEM((K * num_t, tm, cp), jnp.float32),   # T_0..T_{K-1}
                pltpu.SemaphoreType.DMA(()),                    # x -> T_0 copy
            ],
        ),
        compiler_params=pltpu.CompilerParams(
            # The recursion pass is a global barrier and i/j both touch the
            # shared T scratch, so no axis is safely megacore-parallel.
            # TODO(synk): v7x 2nd TensorCore via per-pass pallas_calls.
            dimension_semantics=("arbitrary", "arbitrary", "arbitrary"),
            vmem_limit_bytes=vmem_limit,
        ),
        cost_estimate=pl.CostEstimate(flops=flops, transcendentals=0,
                                      bytes_accessed=bytes_accessed),
    )(lhat_p, x_p, w_p, b_p)

    return out[:N, :c_out]


# ----------------------------------------------------------------------------
# Pure-JAX f32 reference for sanity checking
# ----------------------------------------------------------------------------
def _reference(x, edge_index, edge_weight, weights, bias, *, num_nodes):
    N = num_nodes
    K = weights.shape[0]
    row, col = edge_index[0], edge_index[1]
    ew = jnp.where(row != col, edge_weight.astype(jnp.float32), 0.0)
    adj = jnp.zeros((N, N), dtype=jnp.float32).at[row, col].add(ew)
    deg = adj.sum(axis=1)
    dis = jnp.where(deg > 0.0, 1.0 / jnp.sqrt(deg), 0.0)
    l_hat = -(dis[:, None] * adj * dis[None, :])

    tx0 = x.astype(jnp.float32)
    out = tx0 @ weights[0]
    tx1 = l_hat @ tx0
    out = out + tx1 @ weights[1]
    for k in range(2, K):
        tx2 = 2.0 * (l_hat @ tx1) - tx0
        out = out + tx2 @ weights[k]
        tx0, tx1 = tx1, tx2
    return jnp.maximum(out + bias[None, :], 0.0)


if __name__ == "__main__":
    key = jax.random.PRNGKey(0)
    k_x, k_w, k_b, k_ew = jax.random.split(key, 4)

    # Small, module-consistent shapes: N nodes, in/out channels, K=3 hops.
    N, IN_C, OUT_C, K = 16, 4, 8, 3

    x = jax.random.normal(k_x, (N, IN_C), dtype=jnp.float32)

    # Deterministic small graph: ring edges in both directions.
    src = jnp.concatenate([jnp.arange(N), jnp.arange(N)])
    dst = jnp.concatenate([(jnp.arange(N) + 1) % N, (jnp.arange(N) - 1) % N])
    edge_index = jnp.stack([src, dst]).astype(jnp.int32)            # [2, E]
    edge_weight = jax.random.uniform(k_ew, (edge_index.shape[1],),
                                     minval=0.5, maxval=1.5)

    # ChebConv params: K Linear(in, out, bias=False) + shared bias(out).
    weights = (jax.random.normal(k_w, (K, IN_C, OUT_C), dtype=jnp.float32)
               * (1.0 / jnp.sqrt(IN_C)))
    bias = jax.random.normal(k_b, (OUT_C,), dtype=jnp.float32) * 0.1

    fwd = jax.jit(cheb_net_forward, static_argnames=("num_nodes",))
    out = jax.block_until_ready(
        fwd(x, edge_index, edge_weight, weights, bias, num_nodes=N))

    ref = _reference(x, edge_index, edge_weight, weights, bias, num_nodes=N)
    assert out.shape == (N, OUT_C)
    # bf16 adjacency / bf16 matmul operands (f32 accumulation) vs f32 reference.
    assert jnp.allclose(out, ref, atol=5e-2, rtol=5e-2), "mismatch vs reference"

    print("KERNEL_OK")
</pallas_src>

<mosaic_0001>
module attributes {stable_mosaic.version = 11 : i64} {
  func.func private @main(%arg0: i32) attributes {dimension_semantics = [#tpu.dimension_semantics<core_parallel>], iteration_bounds = array<i64: 2>, tpu.core_type = #tpu.core_type<sc_scalar_subcore>, window_params = []} {
    return
  }
}

module attributes {stable_mosaic.version = 11 : i64} {
  func.func private @main(%arg0: i32) attributes {dimension_semantics = [#tpu.dimension_semantics<core_parallel>], iteration_bounds = array<i64: 2>, tpu.core_type = #tpu.core_type<sc_scalar_subcore>, window_params = []} {
    return
  }
}

module attributes {stable_mosaic.version = 11 : i64} {
  func.func @_cheb_kernel(%arg0: i32, %arg1: i32, %arg2: i32, %arg3: memref<128x128xbf16, #tpu.memory_space<vmem>>, %arg4: memref<1x128x128xf32, #tpu.memory_space<any>>, %arg5: memref<384x128xbf16, #tpu.memory_space<vmem>>, %arg6: memref<1x128xf32, #tpu.memory_space<vmem>>, %arg7: memref<128x128xf32, #tpu.memory_space<vmem>>, %arg8: memref<128x128xf32, #tpu.memory_space<vmem>>, %arg9: memref<3x128x128xf32, #tpu.memory_space<vmem>>, %arg10: memref<!tpu.dma_semaphore, #tpu.memory_space<semaphore_mem>>) attributes {dimension_semantics = [#tpu.dimension_semantics<arbitrary>, #tpu.dimension_semantics<arbitrary>, #tpu.dimension_semantics<arbitrary>], iteration_bounds = array<i64: 2, 1, 1>, scalar_prefetch = 0 : i64, scratch_operands = 3 : i64, tpu.core_type = #tpu.core_type<tc>, window_params = [{pipeline_mode = #tpu.pipeline_mode<synchronous>, transform_indices = @transform_0, window_bounds = array<i64: 128, 128>}, {}, {pipeline_mode = #tpu.pipeline_mode<synchronous>, transform_indices = @transform_2, window_bounds = array<i64: 384, 128>}, {pipeline_mode = #tpu.pipeline_mode<synchronous>, transform_indices = @transform_3, window_bounds = array<i64: 1, 128>}, {transform_indices = @transform_4, window_bounds = array<i64: 128, 128>}]} {
    %c0_i32 = arith.constant 0 : i32
    %0 = arith.cmpi eq, %arg0, %c0_i32 : i32
    %c0_i32_0 = arith.constant 0 : i32
    %1 = arith.cmpi eq, %arg1, %c0_i32_0 : i32
    %2 = arith.andi %0, %1 : i1
    %c0_i32_1 = arith.constant 0 : i32
    %3 = arith.cmpi eq, %arg2, %c0_i32_1 : i32
    %4 = arith.andi %2, %3 : i1
    %5 = arith.extui %4 : i1 to i32
    %c0_i32_2 = arith.constant 0 : i32
    %6 = arith.cmpi ne, %5, %c0_i32_2 : i32
    scf.if %6 {
      %c0_i32_14 = arith.constant 0 : i32
      %c0_i32_15 = arith.constant 0 : i32
      %c0_i32_16 = arith.constant 0 : i32
      %27 = tpu.memref_slice %arg9[%c0_i32_14, %c0_i32_15, %c0_i32_16] : memref<3x128x128xf32, #tpu.memory_space<vmem>> -> memref<1x128x128xf32, #tpu.memory_space<vmem>>
      tpu.enqueue_dma source(%arg4 : memref<1x128x128xf32, #tpu.memory_space<any>>) target(%27 : memref<1x128x128xf32, #tpu.memory_space<vmem>>) target_semaphore(%arg10 : memref<!tpu.dma_semaphore, #tpu.memory_space<semaphore_mem>>)
      %c0_i32_17 = arith.constant 0 : i32
      %c0_i32_18 = arith.constant 0 : i32
      %c0_i32_19 = arith.constant 0 : i32
      %28 = tpu.memref_slice %arg9[%c0_i32_17, %c0_i32_18, %c0_i32_19] : memref<3x128x128xf32, #tpu.memory_space<vmem>> -> memref<1x128x128xf32, #tpu.memory_space<vmem>>
      tpu.wait_dma2 semaphore(%arg10 : memref<!tpu.dma_semaphore, #tpu.memory_space<semaphore_mem>>) src(%arg4 : memref<1x128x128xf32, #tpu.memory_space<any>>) dst(%28 : memref<1x128x128xf32, #tpu.memory_space<vmem>>)
    } else {
    }
    %c0_i32_3 = arith.constant 0 : i32
    %7 = arith.cmpi eq, %arg2, %c0_i32_3 : i32
    %8 = arith.extui %7 : i1 to i32
    %c0_i32_4 = arith.constant 0 : i32
    %9 = arith.cmpi ne, %8, %c0_i32_4 : i32
    scf.if %9 {
      %cst_14 = arith.constant 0.000000e+00 : f32
      %27 = vector.broadcast %cst_14 : f32 to vector<128x128xf32>
      %c0_15 = arith.constant 0 : index
      %c0_16 = arith.constant 0 : index
      %28 = vector.load %arg8[%c0_15, %c0_16] : memref<128x128xf32, #tpu.memory_space<vmem>>, vector<128x128xf32>
      tpu.vector_store %arg8[%c0_15, %c0_16], %27 {strides = array<i32>} : memref<128x128xf32, #tpu.memory_space<vmem>>, vector<128x128xf32>,
    } else {
    }
    %c128_i32 = arith.constant 128 : i32
    %10 = arith.muli %arg1, %c128_i32 : i32
    %11 = tpu.assume_multiple %10, 128 : i32
    %12 = arith.index_cast %11 : i32 to index
    %c0 = arith.constant 0 : index
    %13 = vector.load %arg3[%12, %c0] : memref<128x128xbf16, #tpu.memory_space<vmem>>, vector<128x128xbf16>
    %c1_i32 = arith.constant 1 : i32
    %14 = arith.muli %arg0, %c1_i32 : i32
    %c0_i32_5 = arith.constant 0 : i32
    %15 = arith.addi %14, %c0_i32_5 : i32
    %16 = arith.index_cast %15 : i32 to index
    %c0_6 = arith.constant 0 : index
    %c0_7 = arith.constant 0 : index
    %17 = vector.load %arg9[%16, %c0_6, %c0_7] : memref<3x128x128xf32, #tpu.memory_space<vmem>>, vector<1x128x128xf32>
    %18 = vector.shape_cast %17 : vector<1x128x128xf32> to vector<128x128xf32>
    %19 = arith.truncf %18 : vector<128x128xf32> to vector<128x128xbf16>
    %c0_8 = arith.constant 0 : index
    %c0_9 = arith.constant 0 : index
    %20 = vector.load %arg8[%c0_8, %c0_9] : memref<128x128xf32, #tpu.memory_space<vmem>>, vector<128x128xf32>
    %cst = arith.constant dense<0.000000e+00> : vector<128x128xf32>
    %21 = tpu.matmul %13, %19, %cst {dimension_numbers = #tpu.dot_dimension_numbers<[1], [0], [0], [1], [0, 0, 1, 1], [], []>} : vector<128x128xbf16>, vector<128x128xbf16>, vector<128x128xf32> -> vector<128x128xf32>
    %22 = arith.addf %20, %21 : vector<128x128xf32>
    %c0_10 = arith.constant 0 : index
    %c0_11 = arith.constant 0 : index
    %23 = vector.load %arg8[%c0_10, %c0_11] : memref<128x128xf32, #tpu.memory_space<vmem>>, vector<128x128xf32>
    tpu.vector_store %arg8[%c0_10, %c0_11], %22 {strides = array<i32>} : memref<128x128xf32, #tpu.memory_space<vmem>>, vector<128x128xf32>,
    %c0_i32_12 = arith.constant 0 : i32
    %24 = arith.cmpi eq, %arg2, %c0_i32_12 : i32
    %25 = arith.extui %24 : i1 to i32
    %c0_i32_13 = arith.constant 0 : i32
    %26 = arith.cmpi ne, %25, %c0_i32_13 : i32
    scf.if %26 {
      %c0_14 = arith.constant 0 : index
      %c0_15 = arith.constant 0 : index
      %27 = vector.load %arg8[%c0_14, %c0_15] : memref<128x128xf32, #tpu.memory_space<vmem>>, vector<128x128xf32>
      %c1_i32_16 = arith.constant 1 : i32
      %28 = arith.subi %arg0, %c1_i32_16 : i32
      %c0_i32_17 = arith.constant 0 : i32
      %29 = arith.maxsi %28, %c0_i32_17 : i32
      %c1_i32_18 = arith.constant 1 : i32
      %30 = arith.muli %29, %c1_i32_18 : i32
      %31 = arith.addi %30, %arg1 : i32
      %32 = arith.index_cast %31 : i32 to index
      %c0_19 = arith.constant 0 : index
      %c0_20 = arith.constant 0 : index
      %33 = vector.load %arg9[%32, %c0_19, %c0_20] : memref<3x128x128xf32, #tpu.memory_space<vmem>>, vector<1x128x128xf32>
      %34 = vector.shape_cast %33 : vector<1x128x128xf32> to vector<128x128xf32>
      %c0_i32_21 = arith.constant 0 : i32
      %35 = arith.cmpi eq, %arg0, %c0_i32_21 : i32
      %cst_22 = arith.constant 2.000000e+00 : f32
      %36 = vector.broadcast %cst_22 : f32 to vector<128x128xf32>
      %37 = arith.mulf %36, %27 : vector<128x128xf32>
      %38 = arith.subf %37, %34 : vector<128x128xf32>
      %39 = arith.select %35, %27, %38 : vector<128x128xf32>
      %c1_i32_23 = arith.constant 1 : i32
      %40 = arith.addi %arg0, %c1_i32_23 : i32
      %c1_i32_24 = arith.constant 1 : i32
      %41 = arith.muli %40, %c1_i32_24 : i32
      %42 = arith.addi %41, %arg1 : i32
      %43 = arith.index_cast %42 : i32 to index
      %c0_25 = arith.constant 0 : index
      %c0_26 = arith.constant 0 : index
      %44 = vector.load %arg9[%43, %c0_25, %c0_26] : memref<3x128x128xf32, #tpu.memory_space<vmem>>, vector<1x128x128xf32>
      %45 = vector.shape_cast %44 : vector<1x128x128xf32> to vector<128x128xf32>
      %46 = vector.shape_cast %39 : vector<128x128xf32> to vector<1x128x128xf32>
      tpu.vector_store %arg9[%43, %c0_25, %c0_26], %46 {strides = array<i32>} : memref<3x128x128xf32, #tpu.memory_space<vmem>>, vector<1x128x128xf32>,
      %c1_i32_27 = arith.constant 1 : i32
      %47 = arith.cmpi eq, %arg0, %c1_i32_27 : i32
      %48 = arith.extui %47 : i1 to i32
      %c0_i32_28 = arith.constant 0 : i32
      %49 = arith.cmpi ne, %48, %c0_i32_28 : i32
      scf.if %49 {
        %c0_i32_29 = arith.constant 0 : i32
        %50 = arith.addi %c0_i32_29, %arg1 : i32
        %51 = arith.index_cast %50 : i32 to index
        %c0_30 = arith.constant 0 : index
        %c0_31 = arith.constant 0 : index
        %52 = vector.load %arg9[%51, %c0_30, %c0_31] : memref<3x128x128xf32, #tpu.memory_space<vmem>>, vector<1x128x128xf32>
        %53 = vector.shape_cast %52 : vector<1x128x128xf32> to vector<128x128xf32>
        %c1_i32_32 = arith.constant 1 : i32
        %54 = arith.addi %c1_i32_32, %arg1 : i32
        %55 = arith.index_cast %54 : i32 to index
        %c0_33 = arith.constant 0 : index
        %c0_34 = arith.constant 0 : index
        %56 = vector.load %arg9[%55, %c0_33, %c0_34] : memref<3x128x128xf32, #tpu.memory_space<vmem>>, vector<1x128x128xf32>
        %57 = vector.shape_cast %56 : vector<1x128x128xf32> to vector<128x128xf32>
        %58 = tpu.concatenate %53, %57, %39 in 1 : vector<128x128xf32>, vector<128x128xf32>, vector<128x128xf32> -> vector<128x384xf32>
        %59 = arith.truncf %58 : vector<128x384xf32> to vector<128x384xbf16>
        %c0_35 = arith.constant 0 : index
        %c0_36 = arith.constant 0 : index
        %60 = vector.load %arg5[%c0_35, %c0_36] : memref<384x128xbf16, #tpu.memory_space<vmem>>, vector<384x128xbf16>
        %cst_37 = arith.constant dense<0.000000e+00> : vector<128x128xf32>
        %61 = tpu.matmul %59, %60, %cst_37 {dimension_numbers = #tpu.dot_dimension_numbers<[1], [0], [0], [1], [0, 0, 1, 1], [], []>} : vector<128x384xbf16>, vector<384x128xbf16>, vector<128x128xf32> -> vector<128x128xf32>
        %c0_38 = arith.constant 0 : index
        %c0_39 = arith.constant 0 : index
        %62 = vector.load %arg6[%c0_38, %c0_39] : memref<1x128xf32, #tpu.memory_space<vmem>>, vector<1x128xf32>
        %63 = vector.broadcast %62 : vector<1x128xf32> to vector<128x128xf32>
        %64 = arith.addf %61, %63 : vector<128x128xf32>
        %cst_40 = arith.constant 0.000000e+00 : f32
        %65 = vector.broadcast %cst_40 : f32 to vector<128x128xf32>
        %66 = arith.maximumf %64, %65 : vector<128x128xf32>
        %c0_41 = arith.constant 0 : index
        %c0_42 = arith.constant 0 : index
        %67 = vector.load %arg7[%c0_41, %c0_42] : memref<128x128xf32, #tpu.memory_space<vmem>>, vector<128x128xf32>
        tpu.vector_store %arg7[%c0_41, %c0_42], %66 {strides = array<i32>} : memref<128x128xf32, #tpu.memory_space<vmem>>, vector<128x128xf32>,
      } else {
      }
    } else {
    }
    return
  }
  func.func @transform_0(%arg0: i32, %arg1: i32, %arg2: i32) -> (i32, i32) {
    %c0_i32 = arith.constant 0 : i32
    %c0_i32_0 = arith.constant 0 : i32
    %c0_i32_1 = arith.constant 0 : i32
    return %c0_i32, %c0_i32_0 : i32, i32
  }
  func.func @transform_2(%arg0: i32, %arg1: i32, %arg2: i32) -> (i32, i32) {
    %c0_i32 = arith.constant 0 : i32
    %c0_i32_0 = arith.constant 0 : i32
    %c0_i32_1 = arith.constant 0 : i32
    return %c0_i32, %c0_i32_0 : i32, i32
  }
  func.func @transform_3(%arg0: i32, %arg1: i32, %arg2: i32) -> (i32, i32) {
    %c0_i32 = arith.constant 0 : i32
    %c0_i32_0 = arith.constant 0 : i32
    %c0_i32_1 = arith.constant 0 : i32
    return %c0_i32, %c0_i32_0 : i32, i32
  }
  func.func @transform_4(%arg0: i32, %arg1: i32, %arg2: i32) -> (i32, i32) {
    %c0_i32 = arith.constant 0 : i32
    %c0_i32_0 = arith.constant 0 : i32
    return %arg1, %c0_i32 : i32, i32
  }
}

</mosaic_0001>

<bundles_post_ra>
// kernel: cheb_net_forward.1
= control target key start
LH: loop header
LB: loop body
LE: loop exit
PB: predicated region body
PF: predicated region fallthrough
CT: control target
= control target key end

     0   :  { %s1566_s15 = smov 0   ;;  %s1568_s16 = smov 0   ;;  %s1985_s0 = inlined_call_operand.vmem [shape: bf16[128,128], index: 0, kind: input, shape index: {}]   ;;  %s1986_s1 = inlined_call_operand.vmem [shape: f32[1,128,128], index: 1, kind: input, shape index: {}]   ;;  %s1987_s2 = inlined_call_operand.vmem [shape: bf16[384,128], index: 2, kind: input, shape index: {}]   ;;  %s1988_s3 = inlined_call_operand.vmem [shape: f32[1,128], index: 3, kind: input, shape index: {}]   ;;  %s1989_s4 = inlined_call_operand.vmem [shape: f32[128,128], index: 4, kind: output, shape index: {}]  }
   0x1   :  { %s1570_s17 = smov 0  }
   0x2 LB: > { %s33_s18 = sadd.s32 1, %s1535_s16  ;;  %p1203_p0 = scmp.ge.s32.totalorder %s1539_s17, 1  ;;  %s1539_s17 = sphi %s1570_s17, %s14_s17   ;;  %s1535_s16 = sphi %s1568_s16, %s1993_s16   ;;  %s1531_s15 = sphi %s1566_s15, %s1992_s15  }
   0x3   : > { %p35_p1 = scmp.ge.s32.totalorder %s33_s18, 2  ;;  %p147_p2 = scmp.lt.s32.totalorder %s1539_s17, 3 }
   0x5   : > { %s1995_s18 = smov (%p35_p1, %s33_s18), 0  ;;  %p148_p3 = pnand %p1203_p0, %p147_p2 }
   0x6   : > { %p173_p4 = scmp.eq.s32.totalorder (!%p148_p3), %s1531_s15, 0 }
   0x7   : > { %151 = sbr.rel (%p148_p3) target bundleno = 605 (0x25d), region = 32 }
   0xe   : > { %181 = sbr.rel (!%p173_p4) target bundleno = 26 (0x1a), region = 36  ;;  %v214_v0 = vld [vmem:[%s1986_s1] sm:$0xff] (%p173_p4)  ;;  %v216_v1 = vld [vmem:[%s1986_s1 + $0x8] sm:$0xff] (%p173_p4)  ;;  %v218_v2 = vld [vmem:[%s1986_s1 + $0x10] sm:$0xff] (%p173_p4) }
   0xf   : > { %215 = vst [vmem:[#allocation3] sm:$0xff] (%p173_p4), %v214_v0  ;;  %217 = vst [vmem:[#allocation3 + $0x8] sm:$0xff] (%p173_p4), %v216_v1  ;;  %v220_v3 = vld [vmem:[%s1986_s1 + $0x18] sm:$0xff] (%p173_p4)  ;;  %v222_v4 = vld [vmem:[%s1986_s1 + $0x20] sm:$0xff] (%p173_p4) }
  0x10   : > { %219 = vst [vmem:[#allocation3 + $0x10] sm:$0xff] (%p173_p4), %v218_v2  ;;  %v224_v5 = vld [vmem:[%s1986_s1 + $0x28] sm:$0xff] (%p173_p4)  ;;  %221 = vst [vmem:[#allocation3 + $0x18] sm:$0xff] (%p173_p4), %v220_v3  ;;  %v226_v6 = vld [vmem:[%s1986_s1 + $0x30] sm:$0xff] (%p173_p4) }
  0x11   : > { %223 = vst [vmem:[#allocation3 + $0x20] sm:$0xff] (%p173_p4), %v222_v4  ;;  %225 = vst [vmem:[#allocation3 + $0x28] sm:$0xff] (%p173_p4), %v224_v5  ;;  %v228_v7 = vld [vmem:[%s1986_s1 + $0x38] sm:$0xff] (%p173_p4)  ;;  %v230_v8 = vld [vmem:[%s1986_s1 + $0x40] sm:$0xff] (%p173_p4) }
  0x12   : > { %227 = vst [vmem:[#allocation3 + $0x30] sm:$0xff] (%p173_p4), %v226_v6  ;;  %229 = vst [vmem:[#allocation3 + $0x38] sm:$0xff] (%p173_p4), %v228_v7  ;;  %v232_v9 = vld [vmem:[%s1986_s1 + $0x48] sm:$0xff] (%p173_p4)  ;;  %v234_v10 = vld [vmem:[%s1986_s1 + $0x50] sm:$0xff] (%p173_p4) }
  0x13   : > { %231 = vst [vmem:[#allocation3 + $0x40] sm:$0xff] (%p173_p4), %v230_v8  ;;  %v236_v11 = vld [vmem:[%s1986_s1 + $0x58] sm:$0xff] (%p173_p4)  ;;  %233 = vst [vmem:[#allocation3 + $0x48] sm:$0xff] (%p173_p4), %v232_v9  ;;  %v238_v12 = vld [vmem:[%s1986_s1 + $0x60] sm:$0xff] (%p173_p4) }
  0x14   : > { %235 = vst [vmem:[#allocation3 + $0x50] sm:$0xff] (%p173_p4), %v234_v10  ;;  %237 = vst [vmem:[#allocation3 + $0x58] sm:$0xff] (%p173_p4), %v236_v11  ;;  %v240_v13 = vld [vmem:[%s1986_s1 + $0x68] sm:$0xff] (%p173_p4)  ;;  %v242_v14 = vld [vmem:[%s1986_s1 + $0x70] sm:$0xff] (%p173_p4) }
  0x15   : > { %239 = vst [vmem:[#allocation3 + $0x60] sm:$0xff] %v238_v12  ;;  %241 = vst [vmem:[#allocation3 + $0x68] sm:$0xff] %v240_v13  ;;  %v244_v15 = vld [vmem:[%s1986_s1 + $0x78] sm:$0xff] }
  0x16   : > { %243 = vst [vmem:[#allocation3 + $0x70] sm:$0xff] %v242_v14  ;;  %245 = vst [vmem:[#allocation3 + $0x78] sm:$0xff] %v244_v15 }
  0x17   : > { %253 = vsyncadd [#allocation4], 2048 }
  0x18   : > { %1527 = dma.done.wait [#allocation4], 2048 }
  0x19   : > { %1528 = vsyncadd [#allocation4], 4294965248 }
  0x1a PF: > { %s1206_s29 = sshll.u32 %s1531_s15, 7  ;;  %v1483_v16 = vld [vmem:[%s1985_s0] sm:$0xff]   ;;  %v1485_v42 = vld [vmem:[%s1985_s0 + $0x8] sm:$0xff]   ;;  %v1487_v44 = vld [vmem:[%s1985_s0 + $0x10] sm:$0xff]   ;;  %s1215_s25 = sadd.s32 4294967295, %s1531_s15 }
  0x1b   : > { %v1484_v17 = vld [vmem:[%s1985_s0 + $0x20] sm:$0xff]   ;;  %s1644_s8 = scalar_lea.vmem [#allocation3], %s1206_s29  ;;  %1395 = vmatprep.mubr.bf16.mxu0 %v1483_v16  ;;  %v1486_v43 = vld [vmem:[%s1985_s0 + $0x28] sm:$0xff]   ;;  %v1488_v45 = vld [vmem:[%s1985_s0 + $0x30] sm:$0xff]   ;;  %p537_p5 = scmp.gt.s32.totalorder %s1215_s25, 0 }
  0x1c   : > { %1403 = vmatprep.mubr.bf16.mxu1 %v1484_v17  ;;  %v1489_v46 = vld [vmem:[%s1985_s0 + $0x18] sm:$0xff]   ;;  %s590_s27 = scalar_select %p173_p4, 1, 0 }
  0x1d   : > { %v1490_v47 = vld [vmem:[%s1985_s0 + $0x38] sm:$0xff]   ;;  %s1997_s25 = smov (!%p537_p5, %s1215_s25), 0  ;;  %p1234_p6 = scmp.ne.s32.totalorder %s1531_s15, 1 }
  0x1e   : > { %s1216_s26 = sshll.u32 %s1997_s25, 7  ;;  %v591_v48 = vstv %s590_s27  ;;  %v1492_v53 = vld [vmem:[%s1987_s2] sm:$0xff] (!%p1234_p6)  }
  0x1f   : > { %s1683_s28 = scalar_lea.vmem [#allocation3], %s1216_s26  ;;  %vm1688_vm0 = vcmp.eq.s32.totalorder %v591_v48, 1 }
  0x20   : > { %v544_v49 = vld [vmem:[%s1683_s28 + $0x10] sm:$0xff]  ;;  %v542_v51 = vld [vmem:[%s1683_s28] sm:$0xff]  ;;  %v545_v56 = vld [vmem:[%s1683_s28 + $0x18] sm:$0xff] }
  0x21   : > { %v300_v18 = vld [vmem:[%s1644_s8] sm:$0xff]  ;;  %v301_v19 = vld [vmem:[%s1644_s8 + $0x8] sm:$0xff]  ;;  %v302_v20 = vld [vmem:[%s1644_s8 + $0x10] sm:$0xff] }
  0x22   : > { %v316_v21 = vpack.c.bf16 %v301_v19, %v300_v18  ;;  %v303_v22 = vld [vmem:[%s1644_s8 + $0x18] sm:$0xff]  ;;  %v304_v24 = vld [vmem:[%s1644_s8 + $0x20] sm:$0xff]  ;;  %v305_v25 = vld [vmem:[%s1644_s8 + $0x28] sm:$0xff] }
  0x23   : > { %v317_v23 = vpack.c.bf16 %v303_v22, %v302_v20  ;;  %v318_v26 = vpack.c.bf16 %v305_v25, %v304_v24  ;;  %v306_v27 = vld [vmem:[%s1644_s8 + $0x30] sm:$0xff]  ;;  %v307_v28 = vld [vmem:[%s1644_s8 + $0x38] sm:$0xff]  ;;  %v308_v30 = vld [vmem:[%s1644_s8 + $0x40] sm:$0xff] }
  0x24   : > { %1379 = vmatprep.subr.bf16.mxu0 %v316_v21  ;;  %1443 = vmatprep.subr.bf16.mxu1 %v316_v21  ;;  %v319_v29 = vpack.c.bf16 %v307_v28, %v306_v27  ;;  %v309_v31 = vld [vmem:[%s1644_s8 + $0x48] sm:$0xff]  ;;  %v310_v33 = vld [vmem:[%s1644_s8 + $0x50] sm:$0xff]  ;;  %v311_v34 = vld [vmem:[%s1644_s8 + $0x58] sm:$0xff] }
  0x25   : > { %1380 = vmatpush3.bf16.msra.mxu0 %v316_v21  ;;  %1451 = vmatpush3.bf16.msra.mxu1 %v316_v21  ;;  %v320_v32 = vpack.c.bf16 %v309_v31, %v308_v30  ;;  %v321_v35 = vpack.c.bf16 %v311_v34, %v310_v33  ;;  %v312_v36 = vld [vmem:[%s1644_s8 + $0x60] sm:$0xff]  ;;  %v313_v37 = vld [vmem:[%s1644_s8 + $0x68] sm:$0xff]  ;;  %v314_v39 = vld [vmem:[%s1644_s8 + $0x70] sm:$0xff] }
  0x26   : > { %1381 = vmatprep.subr.bf16.mxu0 %v317_v23  ;;  %1444 = vmatprep.subr.bf16.mxu1 %v317_v23  ;;  %v322_v38 = vpack.c.bf16 %v313_v37, %v312_v36  ;;  %v315_v40 = vld [vmem:[%s1644_s8 + $0x78] sm:$0xff]  ;;  %v552_v50 = vld [vmem:[%s1683_s28 + $0x50] sm:$0xff]  ;;  %v550_v55 = vld [vmem:[%s1683_s28 + $0x40] sm:$0xff] }
  0x27   : > { %v323_v41 = vpack.c.bf16 %v315_v40, %v314_v39  ;;  %v553_v57 = vld [vmem:[%s1683_s28 + $0x58] sm:$0xff]  ;;  %v543_v62 = vld [vmem:[%s1683_s28 + $0x8] sm:$0xff]  ;;  %v1698_v0 = vld [vmem:[%s1683_s28 + $0x30] sm:$0xff] }
  0x28   : > { %v551_v63 = vld [vmem:[%s1683_s28 + $0x48] sm:$0xff]  ;;  %v1701_v1 = vld [vmem:[%s1683_s28 + $0x70] sm:$0xff]  ;;  %v1704_v2 = vld [vmem:[%s1683_s28 + $0x20] sm:$0xff] }
  0x29   : > { %1382 = vmatpush3.bf16.msra.mxu0 %v317_v23  ;;  %1452 = vmatpush3.bf16.msra.mxu1 %v317_v23  ;;  %v1707_v3 = vld [vmem:[%s1683_s28 + $0x60] sm:$0xff]  ;;  %v1710_v8 = vld [vmem:[%s1683_s28 + $0x38] sm:$0xff]  ;;  %v547_v16 = vld [vmem:[%s1683_s28 + $0x28] sm:$0xff] }
  0x2a   : > { %1383 = vmatprep.subr.bf16.mxu0 %v318_v26  ;;  %1445 = vmatprep.subr.bf16.mxu1 %v318_v26  ;;  %v1713_v9 = vld [vmem:[%s1683_s28 + $0x78] sm:$0xff]  ;;  %v555_v17 = vld [vmem:[%s1683_s28 + $0x68] sm:$0xff] }
  0x2d   : > { %1384 = vmatpush3.bf16.msra.mxu0 %v318_v26  ;;  %1453 = vmatpush3.bf16.msra.mxu1 %v318_v26 }
  0x2e   : > { %1385 = vmatprep.subr.bf16.mxu0 %v319_v29  ;;  %1446 = vmatprep.subr.bf16.mxu1 %v319_v29 }
  0x31   : > { %1386 = vmatpush3.bf16.msra.mxu0 %v319_v29  ;;  %1454 = vmatpush3.bf16.msra.mxu1 %v319_v29 }
  0x32   : > { %1387 = vmatprep.subr.bf16.mxu0 %v320_v32  ;;  %1447 = vmatprep.subr.bf16.mxu1 %v320_v32 }
  0x35   : > { %1388 = vmatpush3.bf16.msra.mxu0 %v320_v32  ;;  %1455 = vmatpush3.bf16.msra.mxu1 %v320_v32 }
  0x36   : > { %1389 = vmatprep.subr.bf16.mxu0 %v321_v35  ;;  %1448 = vmatprep.subr.bf16.mxu1 %v321_v35 }
  0x39   : > { %1390 = vmatpush3.bf16.msra.mxu0 %v321_v35  ;;  %1456 = vmatpush3.bf16.msra.mxu1 %v321_v35 }
  0x3a   : > { %1391 = vmatprep.subr.bf16.mxu0 %v322_v38  ;;  %1449 = vmatprep.subr.bf16.mxu1 %v322_v38 }
  0x3d   : > { %1392 = vmatpush3.bf16.msra.mxu0 %v322_v38  ;;  %1457 = vmatpush3.bf16.msra.mxu1 %v322_v38 }
  0x3e   : > { %1393 = vmatprep.subr.bf16.mxu0 %v323_v41  ;;  %1450 = vmatprep.subr.bf16.mxu1 %v323_v41 }
  0x41   : > { %1394 = vmatpush3.bf16.msra.mxu0 %v323_v41  ;;  %1458 = vmatpush3.bf16.msra.mxu1 %v323_v41 }
  0x44   : > { %1396 = vmatmul.mubr.bf16.vlgmr.msra.gmra.mrb[0].mxu0 %v1485_v42  ;;  %1404 = vmatmul.mubr.bf16.vlgmr.msra.gmra.mrb[0].mxu1 %v1486_v43 }
  0x45   : > { %1399 = vmatprep.mubr.bf16.mxu0 %v1487_v44  ;;  %1407 = vmatprep.mubr.bf16.mxu1 %v1488_v45 }
  0x4c   : > { %1400 = vmatmul.mubr.bf16.gmra.mrb[4].mxu0 %v1489_v46  ;;  %1408 = vmatmul.mubr.bf16.gmra.mrb[4].mxu1 %v1490_v47 }
 0x117   : > { %v1397_v52 = vpop.f32.mrb[0].mxu0  ;;  %v1405_v54 = vpop.f32.mrb[0].mxu1 }
 0x118   : > { %v560_v58 = vmul.f32 2.0, %v1397_v52  ;;  %v568_v59 = vmul.f32 2.0, %v1405_v54  ;;  %v422_v60 = vpop.f32.mrb[1].mxu0  ;;  %v454_v61 = vpop.f32.mrb[1].mxu1 }
 0x119   : > { %v558_v4 = vmul.f32 2.0, %v422_v60  ;;  %v566_v5 = vmul.f32 2.0, %v454_v61  ;;  %v1398_v6 = vpop.f32.mrb[2].mxu0  ;;  %v1406_v7 = vpop.f32.mrb[2].mxu1 }
 0x11a   : > { %v576_v10 = vsub.f32 %v560_v58, %v544_v49  ;;  %v584_v11 = vsub.f32 %v568_v59, %v552_v50  ;;  %v561_v12 = vmul.f32 2.0, %v1398_v6  ;;  %v569_v13 = vmul.f32 2.0, %v1406_v7  ;;  %v425_v14 = vpop.f32.mrb[3].mxu0  ;;  %v457_v15 = vpop.f32.mrb[3].mxu1 }
 0x11b   : > { %v574_v18 = vsub.f32 %v558_v4, %v542_v51  ;;  %v582_v19 = vsub.f32 %v566_v5, %v550_v55  ;;  %v559_v20 = vmul.f32 2.0, %v425_v14  ;;  %v567_v21 = vmul.f32 2.0, %v457_v15  ;;  %v1493_v5 = vld [vmem:[%s1987_s2 + $0x48] sm:$0xff] (!%p1234_p6)  }
 0x11c   : > { %v1719_v22 = vsel %vm1688_vm0, %v1397_v52, %v576_v10  ;;  %v1723_v23 = vsel %vm1688_vm0, %v1405_v54, %v584_v11  ;;  %v577_v24 = vsub.f32 %v561_v12, %v545_v56  ;;  %v585_v25 = vsub.f32 %v569_v13, %v553_v57  ;;  %v1498_v10 = vld [vmem:[%s1987_s2 + $0x10] sm:$0xff] (!%p1234_p6)   ;;  %v1499_v11 = vld [vmem:[%s1987_s2 + $0x58] sm:$0xff] (!%p1234_p6)  }
 0x11d   : > { %v1727_v26 = vsel %vm1688_vm0, %v422_v60, %v574_v18  ;;  %v1731_v27 = vsel %vm1688_vm0, %v454_v61, %v582_v19  ;;  %v575_v28 = vsub.f32 %v559_v20, %v543_v62  ;;  %v583_v29 = vsub.f32 %v567_v21, %v551_v63  ;;  %1220 = vst [vmem:[%s1644_s8 + $0x90] sm:$0xff] %v1719_v22  ;;  %v1500_v12 = vld [vmem:[%s1987_s2 + $0x90] sm:$0xff] (!%p1234_p6)   ;;  %v1501_v13 = vld [vmem:[%s1987_s2 + $0x18] sm:$0xff] (!%p1234_p6)   ;;  %v1505_v18 = vld [vmem:[%s1987_s2 + $0x68] sm:$0xff] (!%p1234_p6)  }
 0x11e   : > { %1228 = vst [vmem:[%s1644_s8 + $0xd0] sm:$0xff] %v1723_v23  ;;  %v1739_v30 = vsel %vm1688_vm0, %v1398_v6, %v577_v24  ;;  %v1743_v31 = vsel %vm1688_vm0, %v1406_v7, %v585_v25  ;;  %1218 = vst [vmem:[%s1644_s8 + $0x80] sm:$0xff] %v1727_v26  ;;  %v1494_v6 = vld [vmem:[%s1987_s2 + $0x80] sm:$0xff] (!%p1234_p6)   ;;  %v1495_v7 = vld [vmem:[%s1987_s2 + $0x8] sm:$0xff] (!%p1234_p6)  }
 0x11f   : > { %1226 = vst [vmem:[%s1644_s8 + $0xc0] sm:$0xff] %v1731_v27  ;;  %v594_v32 = vsel %vm1688_vm0, %v425_v14, %v575_v28  ;;  %v1753_v33 = vsel %vm1688_vm0, %v457_v15, %v583_v29  ;;  %v1401_v34 = vpop.f32.mrb[4].mxu0  ;;  %v1409_v35 = vpop.f32.mrb[4].mxu1  ;;  %1221 = vst [vmem:[%s1644_s8 + $0x98] sm:$0xff] %v1739_v30  ;;  %1411 = vmatprep.subr.bf16.mxu1 (!%p1234_p6), %v1494_v6  ;;  %v1502_v14 = vld [vmem:[%s1987_s2 + $0x60] sm:$0xff] (!%p1234_p6)   ;;  %v1503_v15 = vld [vmem:[%s1987_s2 + $0x98] sm:$0xff] (!%p1234_p6)  }
 0x120   : > { %1229 = vst [vmem:[%s1644_s8 + $0xd8] sm:$0xff] %v1743_v31  ;;  %v564_v36 = vmul.f32 2.0, %v1401_v34  ;;  %v572_v37 = vmul.f32 2.0, %v1409_v35  ;;  %v438_v38 = vpop.f32.mrb[5].mxu0  ;;  %v470_v39 = vpop.f32.mrb[5].mxu1  ;;  %1219 = vst [vmem:[%s1644_s8 + $0x88] sm:$0xff] %v594_v32  ;;  %v671_v4 = vpack.c.bf16 (!%p1234_p6), %v594_v32, %v1727_v26  ;;  %1412 = vmatpush3.bf16.msra.mxu1 (!%p1234_p6), %v1494_v6 }
 0x121   : > { %1227 = vst [vmem:[%s1644_s8 + $0xc8] sm:$0xff] %v1753_v33  ;;  %v562_v40 = vmul.f32 2.0, %v438_v38  ;;  %v570_v41 = vmul.f32 2.0, %v470_v39  ;;  %v1402_v42 = vpop.f32.mrb[6].mxu0  ;;  %v1410_v43 = vpop.f32.mrb[6].mxu1  ;;  %v1507_v19 = vld [vmem:[%s1987_s2 + $0x28] sm:$0xff] (!%p1234_p6)  }
 0x122   : > { %v580_v44 = vsub.f32 %v564_v36, %v1698_v0  ;;  %v588_v45 = vsub.f32 %v572_v37, %v1701_v1  ;;  %v565_v46 = vmul.f32 2.0, %v1402_v42  ;;  %v573_v47 = vmul.f32 2.0, %v1410_v43  ;;  %v441_v48 = vpop.f32.mrb[7].mxu0  ;;  %v473_v49 = vpop.f32.mrb[7].mxu1  ;;  %1427 = vmatprep.mubr.bf16.mxu1 (!%p1234_p6), %v671_v4  ;;  %v1509_v20 = vld [vmem:[%s1987_s2 + $0xa8] sm:$0xff] (!%p1234_p6)   ;;  %v1508_v21 = vld [vmem:[%s1987_s2 + $0x70] sm:$0xff] (!%p1234_p6)  }
 0x123   : > { %v578_v50 = vsub.f32 %v562_v40, %v1704_v2  ;;  %v586_v51 = vsub.f32 %v570_v41, %v1707_v3  ;;  %v563_v52 = vmul.f32 2.0, %v441_v48  ;;  %v571_v54 = vmul.f32 2.0, %v473_v49  ;;  %632 = sbr.rel (%p1234_p6) target bundleno = 605 (0x25d), region = 82  ;;  %v1491_v3 = vld [vmem:[%s1987_s2 + $0x40] sm:$0xff] (!%p1234_p6)   ;;  %v1510_v24 = vld [vmem:[%s1987_s2 + $0x30] sm:$0xff] (!%p1234_p6)   ;;  %v1511_v29 = vld [vmem:[%s1987_s2 + $0x78] sm:$0xff] (!%p1234_p6)  }
 0x124   : > { %v1768_v55 = vsel %vm1688_vm0, %v1401_v34, %v580_v44  ;;  %v1772_v56 = vsel %vm1688_vm0, %v1409_v35, %v588_v45  ;;  %v581_v57 = vsub.f32 %v565_v46, %v1710_v8  ;;  %v589_v58 = vsub.f32 %v573_v47, %v1713_v9  ;;  %1299 = vmatprep.subr.bf16.mxu0 (!%p1234_p6), %v1491_v3  ;;  %v1496_v8 = vld [vmem:[%s1987_s2 + $0x50] sm:$0xff] (!%p1234_p6)   ;;  %v1497_v9 = vld [vmem:[%s1987_s2 + $0x88] sm:$0xff] (!%p1234_p6)   ;;  %v1513_v34 = vld [vmem:[%s1987_s2 + $0x38] sm:$0xff] (!%p1234_p6)  }
 0x125   : > { %v1778_v59 = vsel %vm1688_vm0, %v438_v38, %v578_v50  ;;  %v1782_v60 = vsel %vm1688_vm0, %v470_v39, %v586_v51  ;;  %v579_v61 = vsub.f32 %v563_v52, %v547_v16  ;;  %v587_v62 = vsub.f32 %v571_v54, %v555_v17  ;;  %1224 = vst [vmem:[%s1644_s8 + $0xb0] sm:$0xff] %v1768_v55  ;;  %v1504_v16 = vld [vmem:[%s1987_s2 + $0x20] sm:$0xff] (!%p1234_p6)   ;;  %v1512_v25 = vld [vmem:[%s1987_s2 + $0xb0] sm:$0xff] (!%p1234_p6)   ;;  %v1514_v37 = vld [vmem:[%s1987_s2 + $0xb8] sm:$0xff] (!%p1234_p6)  }
 0x126   : > { %1232 = vst [vmem:[%s1644_s8 + $0xf0] sm:$0xff] %v1772_v56  ;;  %v1790_v63 = vsel %vm1688_vm0, %v1402_v42, %v581_v57  ;;  %v1794_v0 = vsel %vm1688_vm0, %v1410_v43, %v589_v58  ;;  %1222 = vst [vmem:[%s1644_s8 + $0xa0] sm:$0xff] %v1778_v59  ;;  %1300 = vmatpush3.bf16.msra.mxu0 (!%p1234_p6), %v1492_v53  ;;  %1413 = vmatprep.subr.bf16.mxu1 (!%p1234_p6), %v1497_v9  ;;  %v1506_v17 = vld [vmem:[%s1987_s2 + $0xa0] sm:$0xff] (!%p1234_p6)  }
 0x127   : > { %1230 = vst [vmem:[%s1644_s8 + $0xe0] sm:$0xff] %v1782_v60  ;;  %v1802_v1 = vsel %vm1688_vm0, %v441_v48, %v579_v61  ;;  %v1806_v2 = vsel %vm1688_vm0, %v473_v49, %v587_v62  ;;  %1225 = vst [vmem:[%s1644_s8 + $0xb8] sm:$0xff] %v1790_v63  ;;  %1301 = vmatprep.subr.bf16.mxu0 (!%p1234_p6), %v1493_v5  ;;  %1414 = vmatpush3.bf16.msra.mxu1 (!%p1234_p6), %v1497_v9 }
 0x128   : > { %1233 = vst [vmem:[%s1644_s8 + $0xf8] sm:$0xff] %v1794_v0  ;;  %1223 = vst [vmem:[%s1644_s8 + $0xa8] sm:$0xff] %v1802_v1  ;;  %1415 = vmatprep.subr.bf16.mxu1 (!%p1234_p6), %v1500_v12  ;;  %v674_v42 = vpack.c.bf16 (!%p1234_p6), %v1739_v30, %v1719_v22  ;;  %v677_v43 = vpack.c.bf16 (!%p1234_p6), %v1802_v1, %v1778_v59  ;;  %v680_v50 = vpack.c.bf16 (!%p1234_p6), %v1790_v63, %v1768_v55 }
 0x129   : > { %1231 = vst [vmem:[%s1644_s8 + $0xe8] sm:$0xff] %v1806_v2  ;;  %v683_v22 = vpack.c.bf16 (!%p1234_p6), %v1753_v33, %v1731_v27  ;;  %v686_v59 = vpack.c.bf16 (!%p1234_p6), %v1743_v31, %v1723_v23  ;;  %v689_v55 = vpack.c.bf16 (!%p1234_p6), %v1806_v2, %v1782_v60  ;;  %v692_v3 = vpack.c.bf16 (!%p1234_p6), %v1794_v0, %v1772_v56 }
 0x12a   : > { %1302 = vmatpush3.bf16.msra.mxu0 %v1495_v7 }
 0x12b   : > { %1303 = vmatprep.subr.bf16.mxu0 %v1496_v8  ;;  %1416 = vmatpush3.bf16.msra.mxu1 %v1500_v12 }
 0x12c   : > { %1417 = vmatprep.subr.bf16.mxu1 %v1503_v15 }
 0x12e   : > { %1304 = vmatpush3.bf16.msra.mxu0 %v1498_v10 }
 0x12f   : > { %1305 = vmatprep.subr.bf16.mxu0 %v1499_v11  ;;  %1418 = vmatpush3.bf16.msra.mxu1 %v1503_v15 }
 0x130   : > { %1419 = vmatprep.subr.bf16.mxu1 %v1506_v17  ;;  %v1235_v26 = vld [vmem:[#allocation3 + $0x80] sm:$0xff]  ;;  %v1236_v28 = vld [vmem:[#allocation3 + $0x88] sm:$0xff]  ;;  %v1237_v38 = vld [vmem:[#allocation3 + $0x90] sm:$0xff] }
 0x131   : > { %v670_v32 = vpack.c.bf16 %v1236_v28, %v1235_v26  ;;  %v634_v35 = vld [vmem:[#allocation3] sm:$0xff]  ;;  %v635_v36 = vld [vmem:[#allocation3 + $0x8] sm:$0xff]  ;;  %v1238_v39 = vld [vmem:[#allocation3 + $0x98] sm:$0xff] }
 0x132   : > { %1306 = vmatpush3.bf16.msra.mxu0 %v1501_v13  ;;  %v669_v40 = vpack.c.bf16 %v635_v36, %v634_v35  ;;  %v673_v41 = vpack.c.bf16 %v1238_v39, %v1237_v38  ;;  %v636_v44 = vld [vmem:[#allocation3 + $0x10] sm:$0xff]  ;;  %v637_v45 = vld [vmem:[#allocation3 + $0x18] sm:$0xff]  ;;  %v1239_v46 = vld [vmem:[#allocation3 + $0xa0] sm:$0xff] }
 0x133   : > { %1307 = vmatprep.subr.bf16.mxu0 %v1502_v14  ;;  %1420 = vmatpush3.bf16.msra.mxu1 %v1506_v17  ;;  %v1240_v47 = vld [vmem:[#allocation3 + $0xa8] sm:$0xff]  ;;  %v672_v48 = vpack.c.bf16 %v637_v45, %v636_v44  ;;  %v638_v30 = vld [vmem:[#allocation3 + $0x20] sm:$0xff]  ;;  %v1241_v52 = vld [vmem:[#allocation3 + $0xb0] sm:$0xff] }
 0x134   : > { %1421 = vmatprep.subr.bf16.mxu1 %v1509_v20  ;;  %924 = vmatprep.mubr.bf16.mxu0 %v670_v32  ;;  %v676_v49 = vpack.c.bf16 %v1240_v47, %v1239_v46  ;;  %v639_v51 = vld [vmem:[#allocation3 + $0x28] sm:$0xff]  ;;  %v1242_v54 = vld [vmem:[#allocation3 + $0xb8] sm:$0xff]  ;;  %v640_v61 = vld [vmem:[#allocation3 + $0x30] sm:$0xff] }
 0x135   : > { %v675_v57 = vpack.c.bf16 %v639_v51, %v638_v30  ;;  %v679_v58 = vpack.c.bf16 %v1242_v54, %v1241_v52  ;;  %v641_v62 = vld [vmem:[#allocation3 + $0x38] sm:$0xff]  ;;  %v1243_v27 = vld [vmem:[#allocation3 + $0xc0] sm:$0xff]  ;;  %v1244_v33 = vld [vmem:[#allocation3 + $0xc8] sm:$0xff] }
 0x136   : > { %1308 = vmatpush3.bf16.msra.mxu0 %v1504_v16  ;;  %v678_v63 = vpack.c.bf16 %v641_v62, %v640_v61  ;;  %v682_v1 = vpack.c.bf16 %v1244_v33, %v1243_v27  ;;  %v642_v4 = vld [vmem:[#allocation3 + $0x40] sm:$0xff]  ;;  %v643_v23 = vld [vmem:[#allocation3 + $0x48] sm:$0xff]  ;;  %v1245_v31 = vld [vmem:[#allocation3 + $0xd0] sm:$0xff] }
 0x137   : > { %1309 = vmatprep.subr.bf16.mxu0 %v1505_v18  ;;  %1422 = vmatpush3.bf16.msra.mxu1 %v1509_v20  ;;  %v1246_v53 = vld [vmem:[#allocation3 + $0xd8] sm:$0xff]  ;;  %v681_v60 = vpack.c.bf16 %v643_v23, %v642_v4  ;;  %v644_v5 = vld [vmem:[#allocation3 + $0x50] sm:$0xff]  ;;  %v1247_v7 = vld [vmem:[#allocation3 + $0xe0] sm:$0xff] }
 0x138   : > { %1423 = vmatprep.subr.bf16.mxu1 %v1512_v25  ;;  %v685_v2 = vpack.c.bf16 %v1246_v53, %v1245_v31  ;;  %v645_v6 = vld [vmem:[#allocation3 + $0x58] sm:$0xff]  ;;  %v1248_v8 = vld [vmem:[#allocation3 + $0xe8] sm:$0xff]  ;;  %v646_v56 = vld [vmem:[#allocation3 + $0x60] sm:$0xff] }
 0x139   : > { %v684_v9 = vpack.c.bf16 %v645_v6, %v644_v5  ;;  %v688_v10 = vpack.c.bf16 %v1248_v8, %v1247_v7  ;;  %v647_v0 = vld [vmem:[#allocation3 + $0x68] sm:$0xff]  ;;  %v1249_v11 = vld [vmem:[#allocation3 + $0xf0] sm:$0xff]  ;;  %v1250_v12 = vld [vmem:[#allocation3 + $0xf8] sm:$0xff] }
 0x13a   : > { %1310 = vmatpush3.bf16.msra.mxu0 %v1507_v19  ;;  %v687_v13 = vpack.c.bf16 %v647_v0, %v646_v56  ;;  %v691_v14 = vpack.c.bf16 %v1250_v12, %v1249_v11  ;;  %v648_v15 = vld [vmem:[#allocation3 + $0x70] sm:$0xff]  ;;  %v649_v16 = vld [vmem:[#allocation3 + $0x78] sm:$0xff]  ;;  %v1907_v20 = vld [vmem:[%s1988_s3] ss:$0 sm:$0xff] }
 0x13b   : > { %1311 = vmatprep.subr.bf16.mxu0 %v1508_v21  ;;  %1424 = vmatpush3.bf16.msra.mxu1 %v1512_v25  ;;  %v690_v17 = vpack.c.bf16 %v649_v16, %v648_v15 }
 0x13c   : > { %1425 = vmatprep.subr.bf16.mxu1 %v1514_v37 }
 0x13e   : > { %1312 = vmatpush3.bf16.msra.mxu0 %v1510_v24 }
 0x13f   : > { %1313 = vmatprep.subr.bf16.mxu0 %v1511_v29  ;;  %1426 = vmatpush3.bf16.msra.mxu1 %v1514_v37 }
 0x142   : > { %1314 = vmatpush3.bf16.msra.mxu0 %v1513_v34  ;;  %1428 = vmatmul.mubr.bf16.vlgmr.msra.gmra.mrb[0].mxu1 %v674_v42 }
 0x143   : > { %1431 = vmatprep.mubr.bf16.mxu1 %v677_v43 }
 0x145   : > { %925 = vmatmul.mubr.bf16.vlgmr.msra.gmra.mrb[0].mxu0 %v669_v40 }
 0x146   : > { %932 = vmatprep.mubr.bf16.mxu0 %v673_v41 }
 0x14a   : > { %1432 = vmatmul.mubr.bf16.gmra.mrb[4].mxu1 %v680_v50 }
 0x14b   : > { %1435 = vmatprep.mubr.bf16.mxu1 %v683_v22 }
 0x14d   : > { %933 = vmatmul.mubr.bf16.gmra.mrb[4].mxu0 %v672_v48 }
 0x14e   : > { %940 = vmatprep.mubr.bf16.mxu0 %v676_v49 }
 0x152   : > { %1436 = vmatmul.mubr.bf16.gmra.mrb[8].mxu1 %v686_v59 }
 0x153   : > { %1439 = vmatprep.mubr.bf16.mxu1 %v689_v55 }
 0x155   : > { %941 = vmatmul.mubr.bf16.gmra.mrb[8].mxu0 %v675_v57 }
 0x156   : > { %948 = vmatprep.mubr.bf16.mxu0 %v679_v58 }
 0x15a   : > { %1440 = vmatmul.mubr.bf16.gmra.mrb[12].mxu1 %v692_v3 }
 0x15d   : > { %949 = vmatmul.mubr.bf16.gmra.mrb[12].mxu0 %v678_v63 }
 0x15e   : > { %956 = vmatprep.mubr.bf16.mxu0 %v682_v1 }
 0x165   : > { %957 = vmatmul.mubr.bf16.gmra.mrb[16].mxu0 %v681_v60 }
 0x166   : > { %964 = vmatprep.mubr.bf16.mxu0 %v685_v2 }
 0x16d   : > { %965 = vmatmul.mubr.bf16.gmra.mrb[20].mxu0 %v684_v9 }
 0x16e   : > { %972 = vmatprep.mubr.bf16.mxu0 %v688_v10 }
 0x175   : > { %973 = vmatmul.mubr.bf16.gmra.mrb[24].mxu0 %v687_v13 }
 0x176   : > { %980 = vmatprep.mubr.bf16.mxu0 %v691_v14 }
 0x17d   : > { %981 = vmatmul.mubr.bf16.gmra.mrb[28].mxu0 %v690_v17 }
 0x215   : > { %v1429_v26 = vpop.f32.mrb[0].mxu1 }
 0x216   : > { %v1023_v32 = vpop.f32.mrb[1].mxu1 }
 0x217   : > { %v1430_v34 = vpop.f32.mrb[2].mxu1 }
 0x218   : > { %v1315_v18 = vpop.f32.mrb[0].mxu0  ;;  %v1026_v37 = vpop.f32.mrb[3].mxu1 }
 0x219   : > { %v1316_v19 = vpop.f32.mrb[1].mxu0 }
 0x21a   : > { %v1317_v21 = vadd.f32 %v1316_v19, %v1315_v18  ;;  %v1318_v24 = vpop.f32.mrb[2].mxu0 }
 0x21b   : > { %v1319_v25 = vpop.f32.mrb[3].mxu0 }
 0x21c   : > { %v1320_v28 = vadd.f32 %v1319_v25, %v1318_v24  ;;  %v927_v29 = vadd.f32 %v1317_v21, %v1907_v20 }
 0x21d   : > { %v1433_v46 = vpop.f32.mrb[4].mxu1 }
 0x21e   : > { %v1024_v35 = vadd.f32 %v1023_v32, %v927_v29  ;;  %v930_v36 = vadd.f32 %v1320_v28, %v1907_v20  ;;  %v1039_v49 = vpop.f32.mrb[5].mxu1 }
 0x21f   : > { %v1434_v50 = vpop.f32.mrb[6].mxu1 }
 0x220   : > { %v1086_v38 = vmax.f32 %v1024_v35, 0.0  ;;  %v1027_v39 = vadd.f32 %v1026_v37, %v930_v36  ;;  %v1321_v40 = vpop.f32.mrb[4].mxu0  ;;  %v1042_v51 = vpop.f32.mrb[7].mxu1 }
 0x221   : > { %v1322_v41 = vpop.f32.mrb[5].mxu0 }
 0x222   : > { %1102 = vst [vmem:[%s1989_s4] sm:$0xff] %v1086_v38  ;;  %v1087_v42 = vmax.f32 %v1027_v39, 0.0  ;;  %v1323_v43 = vadd.f32 %v1322_v41, %v1321_v40  ;;  %v1324_v44 = vpop.f32.mrb[6].mxu0 }
 0x223   : > { %v1325_v45 = vpop.f32.mrb[7].mxu0 }
 0x224   : > { %1103 = vst [vmem:[%s1989_s4 + $0x8] sm:$0xff] %v1087_v42  ;;  %v935_v47 = vadd.f32 %v1323_v43, %v1907_v20  ;;  %v1326_v48 = vadd.f32 %v1325_v45, %v1324_v44 }
 0x225   : > { %v1437_v27 = vpop.f32.mrb[8].mxu1 }
 0x226   : > { %v1032_v22 = vadd.f32 %v1429_v26, %v935_v47  ;;  %v938_v30 = vadd.f32 %v1326_v48, %v1907_v20  ;;  %v1055_v1 = vpop.f32.mrb[9].mxu1 }
 0x227   : > { %v1438_v3 = vpop.f32.mrb[10].mxu1 }
 0x228   : > { %v1088_v52 = vmax.f32 %v1032_v22, 0.0  ;;  %v1035_v54 = vadd.f32 %v1430_v34, %v938_v30  ;;  %v1327_v57 = vpop.f32.mrb[8].mxu0  ;;  %v1058_v31 = vpop.f32.mrb[11].mxu1 }
 0x229   : > { %v1328_v58 = vpop.f32.mrb[9].mxu0 }
 0x22a   : > { %1104 = vst [vmem:[%s1989_s4 + $0x10] sm:$0xff] %v1088_v52  ;;  %v1089_v59 = vmax.f32 %v1035_v54, 0.0  ;;  %v1329_v55 = vadd.f32 %v1328_v58, %v1327_v57  ;;  %v1330_v61 = vpop.f32.mrb[10].mxu0 }
 0x22b   : > { %v1331_v62 = vpop.f32.mrb[11].mxu0 }
 0x22c   : > { %1105 = vst [vmem:[%s1989_s4 + $0x18] sm:$0xff] %v1089_v59  ;;  %v1332_v33 = vadd.f32 %v1331_v62, %v1330_v61  ;;  %v943_v63 = vadd.f32 %v1329_v55, %v1907_v20 }
 0x22d   : > { %v1930_v10 = vpop.f32.mrb[12].mxu1 }
 0x22e   : > { %v1040_v4 = vadd.f32 %v1039_v49, %v943_v63  ;;  %v946_v23 = vadd.f32 %v1332_v33, %v1907_v20  ;;  %v1071_v11 = vpop.f32.mrb[13].mxu1 }
 0x22f   : > { %v1442_v12 = vpop.f32.mrb[14].mxu1 }
 0x230   : > { %v1090_v53 = vmax.f32 %v1040_v4, 0.0  ;;  %v1043_v60 = vadd.f32 %v1042_v51, %v946_v23  ;;  %v1333_v2 = vpop.f32.mrb[12].mxu0  ;;  %v1074_v15 = vpop.f32.mrb[15].mxu1 }
 0x231   : > { %v1334_v5 = vpop.f32.mrb[13].mxu0 }
 0x232   : > { %1106 = vst [vmem:[%s1989_s4 + $0x20] sm:$0xff] %v1090_v53  ;;  %v1091_v6 = vmax.f32 %v1043_v60, 0.0  ;;  %v1335_v7 = vadd.f32 %v1334_v5, %v1333_v2  ;;  %v1336_v8 = vpop.f32.mrb[14].mxu0 }
 0x233   : > { %v1337_v9 = vpop.f32.mrb[15].mxu0 }
 0x234   : > { %1107 = vst [vmem:[%s1989_s4 + $0x28] sm:$0xff] %v1091_v6  ;;  %v951_v56 = vadd.f32 %v1335_v7, %v1907_v20  ;;  %v1338_v0 = vadd.f32 %v1337_v9, %v1336_v8 }
 0x236   : > { %v1048_v13 = vadd.f32 %v1433_v46, %v951_v56  ;;  %v954_v14 = vadd.f32 %v1338_v0, %v1907_v20 }
 0x238   : > { %v1092_v16 = vmax.f32 %v1048_v13, 0.0  ;;  %v1051_v17 = vadd.f32 %v1434_v50, %v954_v14  ;;  %v1339_v18 = vpop.f32.mrb[16].mxu0 }
 0x239   : > { %v1340_v19 = vpop.f32.mrb[17].mxu0 }
 0x23a   : > { %1108 = vst [vmem:[%s1989_s4 + $0x30] sm:$0xff] %v1092_v16  ;;  %v1093_v21 = vmax.f32 %v1051_v17, 0.0  ;;  %v1341_v24 = vadd.f32 %v1340_v19, %v1339_v18  ;;  %v1342_v25 = vpop.f32.mrb[18].mxu0 }
 0x23b   : > { %v1343_v26 = vpop.f32.mrb[19].mxu0 }
 0x23c   : > { %1109 = vst [vmem:[%s1989_s4 + $0x38] sm:$0xff] %v1093_v21  ;;  %v1344_v28 = vadd.f32 %v1343_v26, %v1342_v25  ;;  %v959_v29 = vadd.f32 %v1341_v24, %v1907_v20 }
 0x23e   : > { %v1056_v32 = vadd.f32 %v1055_v1, %v959_v29  ;;  %v962_v34 = vadd.f32 %v1344_v28, %v1907_v20 }
 0x240   : > { %v1094_v35 = vmax.f32 %v1056_v32, 0.0  ;;  %v1059_v36 = vadd.f32 %v1058_v31, %v962_v34  ;;  %v1345_v37 = vpop.f32.mrb[20].mxu0 }
 0x241   : > { %v1346_v38 = vpop.f32.mrb[21].mxu0 }
 0x242   : > { %1110 = vst [vmem:[%s1989_s4 + $0x40] sm:$0xff] %v1094_v35  ;;  %v1095_v39 = vmax.f32 %v1059_v36, 0.0  ;;  %v1347_v40 = vadd.f32 %v1346_v38, %v1345_v37  ;;  %v1348_v41 = vpop.f32.mrb[22].mxu0 }
 0x243   : > { %v1349_v42 = vpop.f32.mrb[23].mxu0 }
 0x244   : > { %1111 = vst [vmem:[%s1989_s4 + $0x48] sm:$0xff] %v1095_v39  ;;  %v967_v43 = vadd.f32 %v1347_v40, %v1907_v20  ;;  %v1350_v44 = vadd.f32 %v1349_v42, %v1348_v41 }
 0x246   : > { %v1064_v45 = vadd.f32 %v1437_v27, %v967_v43  ;;  %v970_v46 = vadd.f32 %v1350_v44, %v1907_v20 }
 0x248   : > { %v1096_v47 = vmax.f32 %v1064_v45, 0.0  ;;  %v1067_v48 = vadd.f32 %v1438_v3, %v970_v46  ;;  %v1351_v49 = vpop.f32.mrb[24].mxu0 }
 0x249   : > { %v1352_v50 = vpop.f32.mrb[25].mxu0 }
 0x24a   : > { %1112 = vst [vmem:[%s1989_s4 + $0x50] sm:$0xff] %v1096_v47  ;;  %v1097_v22 = vmax.f32 %v1067_v48, 0.0  ;;  %v1353_v30 = vadd.f32 %v1352_v50, %v1351_v49  ;;  %v1354_v51 = vpop.f32.mrb[26].mxu0 }
 0x24b   : > { %v1355_v52 = vpop.f32.mrb[27].mxu0 }
 0x24c   : > { %1113 = vst [vmem:[%s1989_s4 + $0x58] sm:$0xff] %v1097_v22  ;;  %v1356_v54 = vadd.f32 %v1355_v52, %v1354_v51  ;;  %v975_v57 = vadd.f32 %v1353_v30, %v1907_v20 }
 0x24e   : > { %v1072_v58 = vadd.f32 %v1071_v11, %v975_v57  ;;  %v978_v59 = vadd.f32 %v1356_v54, %v1907_v20 }
 0x250   : > { %v1098_v55 = vmax.f32 %v1072_v58, 0.0  ;;  %v1075_v61 = vadd.f32 %v1074_v15, %v978_v59  ;;  %v1357_v62 = vpop.f32.mrb[28].mxu0 }
 0x251   : > { %v1358_v27 = vpop.f32.mrb[29].mxu0 }
 0x252   : > { %1114 = vst [vmem:[%s1989_s4 + $0x60] sm:$0xff] %v1098_v55  ;;  %v1099_v33 = vmax.f32 %v1075_v61, 0.0  ;;  %v1359_v63 = vadd.f32 %v1358_v27, %v1357_v62  ;;  %v1360_v1 = vpop.f32.mrb[30].mxu0 }
 0x253   : > { %v1361_v3 = vpop.f32.mrb[31].mxu0 }
 0x254   : > { %1115 = vst [vmem:[%s1989_s4 + $0x68] sm:$0xff] %v1099_v33  ;;  %v983_v4 = vadd.f32 %v1359_v63, %v1907_v20  ;;  %v1362_v23 = vadd.f32 %v1361_v3, %v1360_v1 }
 0x256   : > { %v1080_v31 = vadd.f32 %v1930_v10, %v983_v4  ;;  %v986_v53 = vadd.f32 %v1362_v23, %v1907_v20 }
 0x258   : > { %v1100_v60 = vmax.f32 %v1080_v31, 0.0  ;;  %v1083_v2 = vadd.f32 %v1442_v12, %v986_v53 }
 0x25a   : > { %1116 = vst [vmem:[%s1989_s4 + $0x70] sm:$0xff] %v1100_v60  ;;  %v1101_v5 = vmax.f32 %v1083_v2, 0.0 }
 0x25c   : > { %1117 = vst [vmem:[%s1989_s4 + $0x78] sm:$0xff] %v1101_v5 }
 0x25d PF: > { %s14_s17 = sadd.s32 1, %s1539_s17   ;;  %s1992_s15 = smov %s1535_s16 }
 0x25e   : > { %p11_p7 = scmp.ge.s32.totalorder %s14_s17, 4   ;;  %s1993_s16 = smov %s1995_s18 }
 0x260   :  { %13 = sbr.rel (!%p11_p7) target bundleno = 2 (0x2), region = 123 }
 0x267   :  { %1140 = vsyncmov [#allocation4] }
 0x26a   :  { %s1141_s19 = vpop.sfrf %1140 }
 0x26b   :  { %p1280_p8 = scmp.ne.s32.totalorder %s1141_s19, 0 }
 0x26d   :  { %1145 = shalt.err (%p1280_p8)  }

</bundles_post_ra>
